<compile_context>
chip_gen: v7x
topology: tpu7x:2x2x1
jax: 0.10.0
libtpu: 0.0.40
codegen_flags: <defaults>
</compile_context>

<pallas_src>
import functools

import jax
import jax.numpy as jnp
from jax.experimental import pallas as pl
from jax.experimental.pallas import tpu as pltpu

M_POSITIVE = 0.9
M_NEGATIVE = 0.1
LAMBDA_ = 0.5

_MIB = 1024 * 1024
# Conservative count of simultaneously-live [tb, 128] f32 temporaries the
# compiler may materialize in VMEM (norms, margins, select masks, ...).
_N_LIVE_TMP = 6


def _round_up(x: int, m: int) -> int:
    return (x + m - 1) // m * m


def _margin_loss_kernel(labels_ref, v_ref, seg_ref, out_ref, *,
                        batch_size: int, tile_b: int, has_tail: bool):
    # labels_ref: [TB, 1]      int32
    # v_ref:      [TB, L*F]    f32 / bf16
    # seg_ref:    [L*F, NCOL]  f32   (constant class-segment one-hot, resident)
    # out_ref:    [1, 8, 128]  f32   (per-tile partial sum, broadcast)
    v = v_ref[...].astype(jnp.float32)                      # [TB, LF]
    tb = v.shape[0]
    ncol = seg_ref.shape[1]

    # Per-class sum of squares on the MXU: seg[f, c] == 1 iff feature f
    # belongs to class c.  Columns c >= n_labels are all-zero, so they yield
    # v_norm == 0 exactly and contribute 0 to the loss (relu(0 - m-) == 0 and
    # they are never the labelled class) -- no explicit class mask needed.
    sq = v * v
    norms_sq = jax.lax.dot_general(
        sq, seg_ref[...],
        dimension_numbers=(((1,), (0,)), ((), ())),
        precision=jax.lax.Precision.HIGHEST,
        preferred_element_type=jnp.float32)                 # [TB, NCOL]
    v_norm = jnp.sqrt(norms_sq)

    # Select between margins directly (no one-hot materialization).
    # relu is folded outside the select:  lambda*relu(x) == relu(lambda*x).
    lab = labels_ref[...]                                   # [TB, 1] int32
    class_iota = jax.lax.broadcasted_iota(jnp.int32, (tb, ncol), 1)
    pos = M_POSITIVE - v_norm
    neg = LAMBDA_ * (v_norm - M_NEGATIVE)
    loss = jnp.maximum(jnp.where(class_iota == lab, pos, neg), 0.0)

    if has_tail:
        # Mask rows past the true batch size (garbage rows of a partial tile
        # may hold NaN/Inf after the math above; where() does not propagate
        # the unselected branch).
        row = (pl.program_id(0) * tile_b
               + jax.lax.broadcasted_iota(jnp.int32, (tb, ncol), 0))
        loss = jnp.where(row < batch_size, loss, 0.0)

    part = jnp.sum(loss)                                    # scalar
    out_ref[...] = jnp.full((1, 8, 128), part, dtype=jnp.float32)


def margin_loss(v: jnp.ndarray, labels: jnp.ndarray, *,
                target_step_bytes: int = 5 * _MIB // 2,     # ~2.5 MiB HBM / step
                vmem_budget_bytes: int = 32 * _MIB,         # blocks + temporaries
                max_tile_b: int = 4096) -> jnp.ndarray:
    """v: [B, n_labels, n_features] (f32 or bf16); labels: [B] int. Scalar loss."""
    B, L, F = v.shape
    LF = L * F
    itemsize = jnp.dtype(v.dtype).itemsize
    ncol = max(128, _round_up(L, 128))                      # MXU / lane width

    # ---- batch-tile size (padded-VMEM aware) -------------------------------
    v_row_hbm = LF * itemsize                               # real HBM bytes/row
    v_row_vmem = _round_up(LF, 128) * itemsize              # lane-padded block row
    lab_row_vmem = 128 * 4                                  # (tb,1) i32 -> 128 lanes
    f32_row = _round_up(LF, 128) * 4                        # in-kernel f32 copy/sq
    per_row_vmem = (2 * (v_row_vmem + lab_row_vmem)         # double-buffered blocks
                    + 2 * f32_row                           # cast + square temporaries
                    + _N_LIVE_TMP * ncol * 4)               # [tb, ncol] f32 temporaries

    tb_hbm = max(8, target_step_bytes // v_row_hbm)
    tb_vmem = max(8, vmem_budget_bytes // per_row_vmem)
    tb = min(tb_hbm, tb_vmem, max_tile_b)
    tb = max(8, (tb // 8) * 8)

    if tb >= B:
        if B >= 1024:
            # Keep >= 2 grid steps so ("parallel",) can shard across the two
            # TensorCores of a v7x chip; no effect on v5e/v6e (1 TC).
            tb = _round_up(pl.cdiv(B, 2), 8)
        else:
            tb = B                  # single full-extent tile (always legal)
    n_tiles = pl.cdiv(B, tb)
    has_tail = (B % tb) != 0

    # ---- inputs -------------------------------------------------------------
    v2d = v.reshape(B, LF)                                  # contiguous => free
    labels2d = labels.astype(jnp.int32).reshape(B, 1)
    # Class-segment one-hot: column c is 1 for the F features of class c.
    feat_class = jnp.arange(LF, dtype=jnp.int32) // F
    seg = (feat_class[:, None] == jnp.arange(ncol, dtype=jnp.int32)[None, :]
           ).astype(jnp.float32)                            # [LF, ncol]

    # ---- VMEM limit from the real padded footprint --------------------------
    seg_bytes = _round_up(LF, 8) * ncol * 4
    out_bytes = 8 * 128 * 4
    footprint = (per_row_vmem * _round_up(tb, 16)
                 + 2 * seg_bytes + 2 * out_bytes)
    vmem_limit = int(min(max(footprint + 4 * _MIB, 16 * _MIB), 48 * _MIB))

    kernel = functools.partial(_margin_loss_kernel, batch_size=B, tile_b=tb,
                               has_tail=has_tail)
    partials = pl.pallas_call(
        kernel,
        out_shape=jax.ShapeDtypeStruct((n_tiles, 8, 128), jnp.float32),
        grid=(n_tiles,),
        in_specs=[
            pl.BlockSpec((tb, 1), lambda i: (i, 0)),        # labels
            pl.BlockSpec((tb, LF), lambda i: (i, 0)),       # v (2-D, lane-dense)
            pl.BlockSpec((LF, ncol), lambda i: (0, 0)),     # seg (resident const)
        ],
        out_specs=pl.BlockSpec((1, 8, 128), lambda i: (i, 0, 0)),
        compiler_params=pltpu.CompilerParams(
            dimension_semantics=("parallel",),
            vmem_limit_bytes=vmem_limit,
        ),
    )(labels2d, v2d, seg)

    # Tiny final reduction (n_tiles values) + batch mean in plain JAX.
    return jnp.sum(partials[:, 0, 0]) / B


def margin_loss_ref(v, labels):
    # Pure-JAX reference (mirrors the PyTorch code exactly).
    v = v.astype(jnp.float32)
    v_norm = jnp.sqrt(jnp.sum(v * v, axis=-1))
    onehot = jax.nn.one_hot(labels, v.shape[1], dtype=jnp.float32)
    loss = onehot * jax.nn.relu(M_POSITIVE - v_norm) + \
        LAMBDA_ * (1.0 - onehot) * jax.nn.relu(v_norm - M_NEGATIVE)
    return jnp.mean(jnp.sum(loss, axis=-1))


if __name__ == "__main__":
    key = jax.random.PRNGKey(0)
    kv, kl, kv2, kl2, kv3, kl3 = jax.random.split(key, 6)
    n_labels, n_features = 10, 16

    # Case 1: tiny shape from the module spec (single full-extent tile, f32).
    batch = 2
    v1 = jax.random.normal(kv, (batch, n_labels, n_features), jnp.float32) * 0.3
    l1 = jax.random.randint(kl, (batch,), 0, n_labels, dtype=jnp.int32)
    out1 = jax.block_until_ready(margin_loss(v1, l1))
    ref1 = margin_loss_ref(v1, l1)
    assert jnp.allclose(out1, ref1, rtol=1e-4, atol=1e-5), (out1, ref1)

    # Case 2: multi-tile path with a masked tail (B=200, TB=64 -> 4 tiles)
    # and a bf16 input crossing the pallas_call boundary uncast.
    batch2 = 200
    v2 = (jax.random.normal(kv2, (batch2, n_labels, n_features), jnp.float32)
          * 0.3).astype(jnp.bfloat16)
    l2 = jax.random.randint(kl2, (batch2,), 0, n_labels, dtype=jnp.int32)
    out2 = jax.block_until_ready(margin_loss(v2, l2, max_tile_b=64))
    ref2 = margin_loss_ref(v2, l2)
    assert jnp.allclose(out2, ref2, rtol=1e-3, atol=1e-3), (out2, ref2)

    # Case 3: mid-sized batch that would fit one tile -> split into 2 tiles
    # (v7x megacore path), no tail, default sizing.
    batch3 = 2048
    v3 = jax.random.normal(kv3, (batch3, n_labels, n_features), jnp.float32) * 0.3
    l3 = jax.random.randint(kl3, (batch3,), 0, n_labels, dtype=jnp.int32)
    out3 = jax.block_until_ready(margin_loss(v3, l3))
    ref3 = margin_loss_ref(v3, l3)
    assert jnp.allclose(out3, ref3, rtol=1e-4, atol=1e-5), (out3, ref3)

    print("KERNEL_OK")
</pallas_src>

<mosaic_0001>
module attributes {stable_mosaic.version = 11 : i64} {
  func.func @_margin_loss_kernel(%arg0: i32, %arg1: memref<2x1xi32, #tpu.memory_space<vmem>>, %arg2: memref<2x160xf32, #tpu.memory_space<vmem>>, %arg3: memref<160x128xf32, #tpu.memory_space<vmem>>, %arg4: memref<1x8x128xf32, #tpu.memory_space<vmem>>) attributes {dimension_semantics = [#tpu.dimension_semantics<parallel>], iteration_bounds = array<i64: 1>, scalar_prefetch = 0 : i64, scratch_operands = 0 : i64, tpu.core_type = #tpu.core_type<tc>, window_params = [{transform_indices = @transform_0, window_bounds = array<i64: 2, 1>}, {transform_indices = @transform_1, window_bounds = array<i64: 2, 160>}, {pipeline_mode = #tpu.pipeline_mode<synchronous>, transform_indices = @transform_2, window_bounds = array<i64: 160, 128>}, {transform_indices = @transform_3, window_bounds = array<i64: 1, 8, 128>}]} {
    %c0 = arith.constant 0 : index
    %c0_0 = arith.constant 0 : index
    %0 = vector.load %arg2[%c0, %c0_0] : memref<2x160xf32, #tpu.memory_space<vmem>>, vector<2x160xf32>
    %1 = arith.mulf %0, %0 : vector<2x160xf32>
    %c0_1 = arith.constant 0 : index
    %c0_2 = arith.constant 0 : index
    %2 = vector.load %arg3[%c0_1, %c0_2] : memref<160x128xf32, #tpu.memory_space<vmem>>, vector<160x128xf32>
    %cst = arith.constant dense<0.000000e+00> : vector<2x128xf32>
    %3 = tpu.matmul %1, %2, %cst {dimension_numbers = #tpu.dot_dimension_numbers<[1], [0], [0], [1], [0, 0, 1, 1], [], []>, precision = #tpu.contract_precision<fp32>} : vector<2x160xf32>, vector<160x128xf32>, vector<2x128xf32> -> vector<2x128xf32>
    %4 = math.sqrt %3 : vector<2x128xf32>
    %c0_3 = arith.constant 0 : index
    %c0_4 = arith.constant 0 : index
    %5 = vector.load %arg1[%c0_3, %c0_4] : memref<2x1xi32, #tpu.memory_space<vmem>>, vector<2x1xi32>
    %6 = tpu.iota {dimensions = array<i32: 1>} : vector<2x128xi32>
    %cst_5 = arith.constant 0.899999976 : f32
    %7 = vector.broadcast %cst_5 : f32 to vector<2x128xf32>
    %8 = arith.subf %7, %4 : vector<2x128xf32>
    %cst_6 = arith.constant 1.000000e-01 : f32
    %9 = vector.broadcast %cst_6 : f32 to vector<2x128xf32>
    %10 = arith.subf %4, %9 : vector<2x128xf32>
    %cst_7 = arith.constant 5.000000e-01 : f32
    %11 = vector.broadcast %cst_7 : f32 to vector<2x128xf32>
    %12 = arith.mulf %11, %10 : vector<2x128xf32>
    %13 = vector.broadcast %5 : vector<2x1xi32> to vector<2x128xi32>
    %14 = arith.cmpi eq, %6, %13 : vector<2x128xi32>
    %15 = arith.select %14, %8, %12 : vector<2x128xi1>, vector<2x128xf32>
    %cst_8 = arith.constant 0.000000e+00 : f32
    %16 = vector.broadcast %cst_8 : f32 to vector<2x128xf32>
    %17 = arith.maximumf %15, %16 : vector<2x128xf32>
    %18 = vector.shape_cast %17 : vector<2x128xf32> to vector<1x2x128xf32>
    %cst_9 = arith.constant dense<0.000000e+00> : vector<1xf32>
    %19 = vector.multi_reduction <add>, %18, %cst_9 [1, 2] : vector<1x2x128xf32> to vector<1xf32>
    %20 = vector.shape_cast %19 : vector<1xf32> to vector<1x1x1xf32>
    %21 = vector.extract %20[0, 0, 0] : f32 from vector<1x1x1xf32>
    %22 = vector.broadcast %21 : f32 to vector<1x8x128xf32>
    %c0_10 = arith.constant 0 : index
    %c0_11 = arith.constant 0 : index
    %c0_12 = arith.constant 0 : index
    %23 = vector.load %arg4[%c0_10, %c0_11, %c0_12] : memref<1x8x128xf32, #tpu.memory_space<vmem>>, vector<1x8x128xf32>
    tpu.vector_store %arg4[%c0_10, %c0_11, %c0_12], %22 {strides = array<i32>} : memref<1x8x128xf32, #tpu.memory_space<vmem>>, vector<1x8x128xf32>,
    return
  }
  func.func @transform_0(%arg0: i32) -> (i32, i32) {
    %c0_i32 = arith.constant 0 : i32
    %c0_i32_0 = arith.constant 0 : i32
    return %arg0, %c0_i32 : i32, i32
  }
  func.func @transform_1(%arg0: i32) -> (i32, i32) {
    %c0_i32 = arith.constant 0 : i32
    %c0_i32_0 = arith.constant 0 : i32
    return %arg0, %c0_i32 : i32, i32
  }
  func.func @transform_2(%arg0: i32) -> (i32, i32) {
    %c0_i32 = arith.constant 0 : i32
    %c0_i32_0 = arith.constant 0 : i32
    %c0_i32_1 = arith.constant 0 : i32
    return %c0_i32, %c0_i32_0 : i32, i32
  }
  func.func @transform_3(%arg0: i32) -> (i32, i32, i32) {
    %c0_i32 = arith.constant 0 : i32
    %c0_i32_0 = arith.constant 0 : i32
    %c0_i32_1 = arith.constant 0 : i32
    return %arg0, %c0_i32, %c0_i32_0 : i32, i32, i32
  }
}

</mosaic_0001>

<bundles_post_ra>
// kernel: tpu_custom_call.1
= control target key start
LH: loop header
LB: loop body
LE: loop exit
PB: predicated region body
PF: predicated region fallthrough
CT: control target
= control target key end

     0   :  { %8 = vsyncpa [#allocation3], 0  ;;  %s1518_s0 = inlined_call_operand.vmem [shape: s32[2,1], index: 0, kind: input, shape index: {}]   ;;  %s1519_s1 = inlined_call_operand.vmem [shape: f32[2,160], index: 1, kind: input, shape index: {}]   ;;  %s1520_s2 = inlined_call_operand.hbm [shape: f32[160,128], index: 2, kind: input, shape index: {}]   ;;  %s1521_s3 = inlined_call_operand.hbm [shape: f32[1,8,128], index: 3, kind: output, shape index: {}]  }
   0x1   :  { %9 = vsyncpa [#allocation4], 0  ;;  %s1067_s12 = smov [#allocation2]   ;;  %s1019_s16 = scalar_lea.hbm %s1520_s2, 2560 }
   0x2   :  { %s19_s13 = sshll.u32 %s1067_s12, 4  ;;  %p1020_p0 = scmp.ne.s32.totalorder %s1520_s2, %s1019_s16  ;;  %s20_s13 = int_to_ptr.vmem [resolvable:$true] %s19_s13 }
   0x3   :  { %p1023_p1 = scmp.lt.u32.totalorder %s1019_s16, %s1520_s2 }
   0x5   :  { %p1025_p2 = pnand %p1023_p1, %p1020_p0 }
   0x7   :  { %1028 = shalt.err (!%p1025_p2)
}
   0x8   :  { %s1029_s21 = scalar_lea.vmem %s20_s13, 2560  ;;  %p1034_p4 = scmp.lt.s32.totalorder %s20_s13, %s20_s13 }
   0x9   :  { %p1030_p3 = scmp.ne.s32.totalorder %s20_s13, %s1029_s21  ;;  %p1035_p5 = scmp.lt.s32.totalorder %s1029_s21, %s1029_s21 }
   0xb   :  { %p1036_p6 = por %p1035_p5, %p1034_p4 }
   0xd   :  { %p1037_p7 = pnand %p1036_p6, %p1030_p3 }
   0xf   :  { %1040 = shalt.err (!%p1037_p7)
}
  0x10   :  { %s1068_s22 = smov 128   ;;  %s1069_s23 = smov 8  }
  0x11   :  { %25 = dma.hbm_to_vmem [thread:$0]  %s1520_s2, 2560, %s20_s13, [#allocation3], %s1068_s22, %s1068_s22, %s1069_s23  }
  0x12   :  { %1063 = dma.done.wait [#allocation3], 2560  }
  0x13   :  { %1064 = vsyncadd [#allocation3], 4294964736  ;;  %v1070_v0 = vmov 0.0|0.0   ;;  %v1071_v1 = vmov 0   ;;  %v1108_v2 = vld [vmem:[#allocation2] sm:$0xff]  ;;  %v1110_v3 = vld [vmem:[#allocation2 + $0x8] sm:$0xff]  ;;  %v1522_v15 = vlaneseq }
  0x14   :  { %818 = vmatprep.subr.bf16.mxu1 %v1070_v0  ;;  %908 = vmatprep.subr.bf16.mxu0 %v1070_v0  ;;  %v1112_v4 = vld [vmem:[#allocation2 + $0x10] sm:$0xff]  ;;  %v65_v5 = vand.u32 4294901760, %v1108_v2  ;;  %v68_v6 = vand.u32 4294901760, %v1110_v3  ;;  %v1116_v7 = vld [vmem:[#allocation2 + $0x18] sm:$0xff]  ;;  %v1120_v10 = vld [vmem:[#allocation2 + $0x20] sm:$0xff]  ;;  %vm61_vm0 = vcmask 261120  }
  0x15   :  { %1016 = vset.pattern.permute.xlu0 %v1071_v1  ;;  %v71_v8 = vand.u32 4294901760, %v1112_v4  ;;  %v74_v9 = vand.u32 4294901760, %v1116_v7  ;;  %v1122_v11 = vld [vmem:[#allocation2 + $0x28] sm:$0xff]  ;;  %v1072_v13 = vmov 1983009808   ;;  %v77_v17 = vand.u32 4294901760, %v1120_v10 }
  0x16   :  { %v1128_v12 = vpack.c.bf16 %v68_v6, %v65_v5  ;;  %v53_v14 = vunpack.c.l.s4 %v1072_v13  ;;  %v80_v18 = vand.u32 4294901760, %v1122_v11  ;;  %v1142_v19 = vld [vmem:[#allocation2 + $0x30] sm:$0xff]  ;;  %v1144_v20 = vld [vmem:[#allocation2 + $0x38] sm:$0xff]  ;;  %v56_v23 = vshrl.u32 %v1522_v15, 7  ;;  %v1162_v27 = vld [vmem:[#allocation2 + $0x40] sm:$0xff] }
  0x17   :  { %v1136_v16 = vpack.c.bf16 %v74_v9, %v71_v8  ;;  %v777_v21 = vld [vmem:[%s1518_s0] sm:$0x3]  ;;  %v83_v25 = vand.u32 4294901760, %v1142_v19  ;;  %v86_v26 = vand.u32 4294901760, %v1144_v20  ;;  %v1164_v28 = vld [vmem:[#allocation2 + $0x48] sm:$0xff]  ;;  %v89_v32 = vand.u32 4294901760, %v1162_v27 }
  0x18   :  { %820 = vmatpush1.bf16.msra.mxu1 %v1128_v12  ;;  %910 = vmatpush1.bf16.msra.mxu0 %v1128_v12  ;;  %v54_v22 = vunpack.c.0.s8 %v53_v14  ;;  %v1156_v24 = vpack.c.bf16 %v80_v18, %v77_v17  ;;  %v29_v29 = vld [vmem:[%s1519_s1] sm:$0xf]  ;;  %v92_v33 = vand.u32 4294901760, %v1164_v28  ;;  %v1183_v35 = vld [vmem:[#allocation2 + $0x58] sm:$0xff]  ;;  %v1197_v41 = vld [vmem:[#allocation2 + $0x60] sm:$0xff]  ;;  %v1225_v52 = vsub.f32 %v1108_v2, %v65_v5  ;;  %s1073_s1 = smov [#allocation5]  }
  0x19   :  { %821 = vmatprep.subr.bf16.mxu1 %v1070_v0  ;;  %911 = vmatprep.subr.bf16.mxu0 %v1070_v0  ;;  %v1175_v31 = vpack.c.bf16 %v86_v26, %v83_v25  ;;  %v1181_v34 = vld [vmem:[#allocation2 + $0x50] sm:$0xff]  ;;  %v30_v36 = vmul.f32 %v29_v29, %v29_v29  ;;  %v98_v40 = vand.u32 4294901760, %v1183_v35  ;;  %v1199_v42 = vld [vmem:[#allocation2 + $0x68] sm:$0xff]  ;;  %v101_v46 = vand.u32 4294901760, %v1197_v41  ;;  %v1217_v50 = vld [vmem:[#allocation2 + $0x78] sm:$0xff]  ;;  %s808_s28 = sshll.u32 %s1073_s1, 4  ;;  %s809_s28 = int_to_ptr.vmem [resolvable:$true] %s808_s28 }
  0x1a   :  { %784 = vperm.xlu0 %1016, %v777_v21   ;;  %v57_v30 = vsub.s32 %v54_v22, %v56_v23  ;;  %v1191_v38 = vpack.c.bf16 %v92_v33, %v89_v32  ;;  %v95_v39 = vand.u32 4294901760, %v1181_v34  ;;  %v104_v47 = vand.u32 4294901760, %v1199_v42  ;;  %v1215_v49 = vld [vmem:[#allocation2 + $0x70] sm:$0xff]  ;;  %v1244_v58 = vld [vmem:[#allocation2 + $0x80] sm:$0xff]  ;;  %v1246_v59 = vld [vmem:[#allocation2 + $0x88] sm:$0xff]  ;;  %s1041_s30 = scalar_lea.vmem %s809_s28, 128  ;;  %p1046_p9 = scmp.lt.s32.totalorder %s809_s28, %s809_s28 }
  0x1b   :  { %v1230_v53 = vsub.f32 %v1110_v3, %v68_v6  ;;  %v107_v56 = vand.u32 4294901760, %v1215_v49  ;;  %v110_v57 = vand.u32 4294901760, %v1217_v50  ;;  %v1254_v61 = vsub.f32 %v1112_v4, %v71_v8  ;;  %v1275_v5 = vld [vmem:[#allocation2 + $0x90] sm:$0xff]  ;;  %p1042_p8 = scmp.ne.s32.totalorder %s809_s28, %s1041_s30  ;;  %p1047_p10 = scmp.lt.s32.totalorder %s1041_s30, %s1041_s30 }
  0x1c   :  { %823 = vmatpush1.bf16.msra.mxu1 %v1136_v16  ;;  %913 = vmatpush1.bf16.msra.mxu0 %v1136_v16  ;;  %v58_v37 = vrot.slane %v30_v36, %v57_v30  ;;  %v1207_v45 = vpack.c.bf16 %v98_v40, %v95_v39  ;;  %v1240_v55 = vpack.c.bf16 %v104_v47, %v101_v46  ;;  %v1526_v1 = vand.u32 4294901760, %v1244_v58 }
  0x1d   :  { %824 = vmatprep.subr.bf16.mxu1 %v1070_v0  ;;  %914 = vmatprep.subr.bf16.mxu0 %v1070_v0  ;;  %v1260_v63 = vsub.f32 %v1116_v7, %v74_v9  ;;  %v1525_v2 = vand.u32 4294901760, %v1246_v59  ;;  %v1273_v4 = vpack.c.bf16 %v110_v57, %v107_v56  ;;  %v167_v7 = vand.u32 4294901760, %v1225_v52  ;;  %v1281_v9 = vld [vmem:[#allocation2 + $0x98] sm:$0xff]  ;;  %p1048_p11 = por %p1047_p10, %p1046_p9 }
  0x1e   :  { %v59_v43 = vcombine.high %v58_v37, %v58_v37  ;;  %v1232_v54 = vand.u32 4294901760, %v58_v37  ;;  %v174_v8 = vand.u32 4294901760, %v1230_v53  ;;  %v1286_v13 = vsub.f32 %v1120_v10, %v77_v17 }
  0x1f   :  { %v1291_v14 = vsub.f32 %v1122_v11, %v80_v18  ;;  %v1524_v21 = vand.u32 4294901760, %v1275_v5  ;;  %v181_v23 = vand.u32 4294901760, %v1254_v61  ;;  %v188_v29 = vand.u32 4294901760, %v1260_v63  ;;  %p1049_p12 = pnand %p1048_p11, %p1042_p8 }
  0x20   :  { %826 = vmatpush1.bf16.msra.mxu1 %v1156_v24  ;;  %916 = vmatpush1.bf16.msra.mxu0 %v1156_v24  ;;  %v62_v44 = vsel %vm61_vm0, %v59_v43, 0  ;;  %v1265_v3 = vsub.f32 %v58_v37, %v1232_v54  ;;  %v1303_v10 = vpack.c.bf16 %v1525_v2, %v1526_v1  ;;  %v1523_v11 = vand.u32 4294901760, %v1281_v9 }
  0x21   :  { %827 = vmatprep.subr.bf16.mxu1 %v1070_v0  ;;  %917 = vmatprep.subr.bf16.mxu0 %v1070_v0  ;;  %v1211_v48 = vand.u32 4294901760, %v62_v44  ;;  %v168_v17 = vsub.f32 %v1225_v52, %v167_v7  ;;  %v175_v18 = vsub.f32 %v1230_v53, %v174_v8  ;;  %v1313_v30 = vsub.f32 %v1142_v19, %v83_v25 }
  0x22   :  { %v156_v22 = vand.u32 4294901760, %v1265_v3  ;;  %v1318_v36 = vsub.f32 %v1144_v20, %v86_v26  ;;  %v182_v43 = vsub.f32 %v1254_v61, %v181_v23  ;;  %v1330_v19 = vpack.c.bf16 %v1523_v11, %v1524_v21 }
  0x23   :  { %v1220_v51 = vsub.f32 %v62_v44, %v1211_v48  ;;  %v189_v44 = vsub.f32 %v1260_v63, %v188_v29  ;;  %v169_v20 = vand.u32 4294901760, %v168_v17  ;;  %v176_v25 = vand.u32 4294901760, %v175_v18 }
  0x24   :  { %829 = vmatpush1.bf16.msra.mxu1 %v1175_v31  ;;  %919 = vmatpush1.bf16.msra.mxu0 %v1175_v31  ;;  %v157_v37 = vsub.f32 %v1265_v3, %v156_v22  ;;  %v202_v26 = vand.u32 4294901760, %v1291_v14  ;;  %v939_v15 = vpack.c.bf16 %v174_v8, %v167_v7  ;;  %v183_v17 = vand.u32 4294901760, %v182_v43 }
  0x25   :  { %830 = vmatprep.subr.bf16.mxu1 %v1070_v0  ;;  %920 = vmatprep.subr.bf16.mxu0 %v1070_v0  ;;  %v150_v60 = vand.u32 4294901760, %v1220_v51  ;;  %v190_v18 = vand.u32 4294901760, %v189_v44  ;;  %v849_v2 = vpack.c.bf16 %v176_v25, %v169_v20  ;;  %v942_v7 = vpack.c.bf16 %v188_v29, %v181_v23 }
  0x26   :  { %v158_v11 = vand.u32 4294901760, %v157_v37  ;;  %v203_v1 = vsub.f32 %v1291_v14, %v202_v26  ;;  %vm789_vm4 = vcmask 1041408  }
  0x27   :  { %v151_v62 = vsub.f32 %v1220_v51, %v150_v60  ;;  %537 = vmatprep.mubr.f32.mxu0 %v150_v60  ;;  %v195_v60 = vand.u32 4294901760, %v1286_v13  ;;  %v852_v44 = vpack.c.bf16 %v190_v18, %v183_v17 }
  0x28   :  { %832 = vmatpush1.bf16.msra.mxu1 %v1191_v38  ;;  %922 = vmatpush1.bf16.msra.mxu0 %v1191_v38  ;;  %v204_v20 = vand.u32 4294901760, %v203_v1 }
  0x29   :  { %833 = vmatprep.subr.bf16.mxu1 %v1070_v0  ;;  %923 = vmatprep.subr.bf16.mxu0 %v1070_v0  ;;  %v152_v6 = vand.u32 4294901760, %v151_v62  ;;  %v1338_v62 = vsub.f32 %v1162_v27, %v89_v32  ;;  %v196_v21 = vsub.f32 %v1286_v13, %v195_v60  ;;  %v209_v27 = vand.u32 4294901760, %v1313_v30 }
  0x2a   :  { %v216_v32 = vand.u32 4294901760, %v1318_v36 }
  0x2b   :  { %153 = vmatprep.mubr.f32.mxu1 %v152_v6  ;;  %v1343_v6 = vsub.f32 %v1164_v28, %v92_v33  ;;  %v1356_v28 = vsub.f32 %v1181_v34, %v95_v39  ;;  %v1361_v33 = vsub.f32 %v1183_v35, %v98_v40  ;;  %v197_v8 = vand.u32 4294901760, %v196_v21 }
  0x2c   :  { %835 = vmatpush1.bf16.msra.mxu1 %v1207_v45  ;;  %925 = vmatpush1.bf16.msra.mxu0 %v1207_v45  ;;  %v223_v37 = vand.u32 4294901760, %v1338_v62  ;;  %v210_v34 = vsub.f32 %v1313_v30, %v209_v27  ;;  %v217_v39 = vsub.f32 %v1318_v36, %v216_v32  ;;  %v1372_v35 = vsub.f32 %v1197_v41, %v101_v46 }
  0x2d   :  { %836 = vmatprep.subr.bf16.mxu1 %v1070_v0  ;;  %926 = vmatprep.subr.bf16.mxu0 %v1070_v0  ;;  %v230_v43 = vand.u32 4294901760, %v1343_v6  ;;  %v1377_v40 = vsub.f32 %v1199_v42, %v104_v47  ;;  %v237_v21 = vand.u32 4294901760, %v1356_v28  ;;  %v855_v41 = vpack.c.bf16 %v204_v20, %v197_v8 }
  0x2e   :  { %v224_v1 = vsub.f32 %v1338_v62, %v223_v37  ;;  %v211_v46 = vand.u32 4294901760, %v210_v34  ;;  %v244_v23 = vand.u32 4294901760, %v1361_v33  ;;  %v1390_v42 = vsub.f32 %v1215_v49, %v107_v56 }
  0x2f   :  { %v1395_v47 = vsub.f32 %v1217_v50, %v110_v57  ;;  %v948_v29 = vpack.c.bf16 %v216_v32, %v209_v27  ;;  %v238_v25 = vsub.f32 %v1356_v28, %v237_v21  ;;  %v251_v18 = vand.u32 4294901760, %v1372_v35 }
  0x30   :  { %838 = vmatpush1.bf16.msra.mxu1 %v1240_v55  ;;  %928 = vmatpush1.bf16.msra.mxu0 %v1240_v55  ;;  %v245_v17 = vsub.f32 %v1361_v33, %v244_v23  ;;  %v258_v49 = vand.u32 4294901760, %v1377_v40  ;;  %v1527_v50 = vand.u32 4294901760, %v1244_v58  ;;  %v1528_v57 = vand.u32 4294901760, %v1246_v59 }
  0x31   :  { %839 = vmatprep.subr.bf16.mxu1 %v1070_v0  ;;  %929 = vmatprep.subr.bf16.mxu0 %v1070_v0  ;;  %v239_v8 = vand.u32 4294901760, %v238_v25  ;;  %v252_v34 = vsub.f32 %v1372_v35, %v251_v18 }
  0x32   :  { %v1406_v56 = vsub.f32 %v1244_v58, %v1527_v50  ;;  %v1411_v27 = vsub.f32 %v1246_v59, %v1528_v57  ;;  %v246_v20 = vand.u32 4294901760, %v245_v17  ;;  %v272_v58 = vand.u32 4294901760, %v1395_v47 }
  0x33   :  { %v1529_v59 = vand.u32 4294901760, %v1275_v5 }
  0x34   :  { %841 = vmatpush1.bf16.msra.mxu1 %v1273_v4  ;;  %931 = vmatpush1.bf16.msra.mxu0 %v1273_v4 }
  0x35   :  { %842 = vmatprep.subr.bf16.mxu1 %v1070_v0  ;;  %932 = vmatprep.subr.bf16.mxu0 %v1070_v0 }
  0x38   :  { %844 = vmatpush1.bf16.msra.mxu1 %v1303_v10  ;;  %934 = vmatpush1.bf16.msra.mxu0 %v1303_v10 }
  0x39   :  { %845 = vmatprep.subr.bf16.mxu1 %v1070_v0  ;;  %935 = vmatprep.subr.bf16.mxu0 %v1070_v0 }
  0x3c   :  { %847 = vmatpush1.bf16.msra.mxu1 %v1330_v19  ;;  %937 = vmatpush1.bf16.msra.mxu0 %v1330_v19 }
  0x3d   :  { %848 = vmatprep.subr.bf16.mxu1 %v1070_v0  ;;  %938 = vmatprep.subr.bf16.mxu0 %v1070_v0 }
  0x3f   :  { %159 = vmatmul.mubr.f32.vlgmr.msra.gmra.mrb[0].mxu1 %v158_v11  ;;  %541 = vmatmul.mubr.f32.vlgmr.msra.gmra.mrb[0].mxu0 %v156_v22  ;;  %v218_v22 = vand.u32 4294901760, %v217_v39  ;;  %v225_v11 = vand.u32 4294901760, %v224_v1  ;;  %v259_v39 = vsub.f32 %v1377_v40, %v258_v49  ;;  %v954_v1 = vpack.c.bf16 %v244_v23, %v237_v21 }
  0x40   :  { %850 = vmatpush1.bf16.msra.mxu1 %v849_v2  ;;  %940 = vmatpush1.bf16.msra.mxu0 %v939_v15  ;;  %v945_v15 = vpack.c.bf16 %v202_v26, %v195_v60  ;;  %v231_v2 = vsub.f32 %v1343_v6, %v230_v43 }
  0x41   :  { %851 = vmatprep.subr.bf16.mxu1 %v1070_v0  ;;  %941 = vmatprep.subr.bf16.mxu0 %v1070_v0  ;;  %v858_v26 = vpack.c.bf16 %v218_v22, %v211_v46  ;;  %v286_v46 = vand.u32 4294901760, %v1411_v27  ;;  %v864_v22 = vpack.c.bf16 %v246_v20, %v239_v8 }
  0x42   :  { %329 = vmatprep.mubr.f32.mxu1 %v1211_v48  ;;  %671 = vmatprep.mubr.f32.mxu0 %v1211_v48  ;;  %v232_v60 = vand.u32 4294901760, %v231_v2 }
  0x43   :  { %v287_v23 = vsub.f32 %v1411_v27, %v286_v46 }
  0x44   :  { %853 = vmatpush1.bf16.msra.mxu1 %v852_v44  ;;  %943 = vmatpush1.bf16.msra.mxu0 %v942_v7  ;;  %v861_v32 = vpack.c.bf16 %v232_v60, %v225_v11  ;;  %v951_v7 = vpack.c.bf16 %v230_v43, %v223_v37  ;;  %v265_v44 = vand.u32 4294901760, %v1390_v42  ;;  %v1422_v37 = vsub.f32 %v1275_v5, %v1529_v59 }
  0x45   :  { %854 = vmatprep.subr.bf16.mxu1 %v1070_v0  ;;  %944 = vmatprep.subr.bf16.mxu0 %v1070_v0  ;;  %v1530_v43 = vand.u32 4294901760, %v1281_v9  ;;  %v260_v11 = vand.u32 4294901760, %v259_v39  ;;  %v273_v5 = vsub.f32 %v1395_v47, %v272_v58 }
  0x46   :  { %v266_v2 = vsub.f32 %v1390_v42, %v265_v44  ;;  %v293_v17 = vand.u32 4294901760, %v1422_v37  ;;  %v960_v57 = vpack.c.bf16 %v272_v58, %v265_v44 }
  0x48   :  { %856 = vmatpush1.bf16.msra.mxu1 %v855_v41  ;;  %946 = vmatpush1.bf16.msra.mxu0 %v945_v15  ;;  %v1427_v15 = vsub.f32 %v1281_v9, %v1530_v43  ;;  %v279_v41 = vand.u32 4294901760, %v1406_v56  ;;  %v957_v9 = vpack.c.bf16 %v258_v49, %v251_v18  ;;  %v267_v60 = vand.u32 4294901760, %v266_v2 }
  0x49   :  { %857 = vmatprep.subr.bf16.mxu1 %v1070_v0  ;;  %947 = vmatprep.subr.bf16.mxu0 %v1070_v0  ;;  %v288_v49 = vand.u32 4294901760, %v287_v23  ;;  %v879_v43 = vpack.c.bf16 %v1230_v53, %v1225_v52  ;;  %v885_v52 = vpack.c.bf16 %v1291_v14, %v1286_v13  ;;  %v1531_v14 = vlaneseq }
  0x4a   :  { %v280_v21 = vsub.f32 %v1406_v56, %v279_v41  ;;  %v300_v50 = vand.u32 4294901760, %v1427_v15 }
  0x4c   :  { %859 = vmatpush1.bf16.msra.mxu1 %v858_v26  ;;  %949 = vmatpush1.bf16.msra.mxu0 %v948_v29  ;;  %v253_v29 = vand.u32 4294901760, %v252_v34  ;;  %v274_v26 = vand.u32 4294901760, %v273_v5  ;;  %v301_v8 = vsub.f32 %v1427_v15, %v300_v50  ;;  %v963_v34 = vpack.c.bf16 %v286_v46, %v279_v41 }
  0x4d   :  { %860 = vmatprep.subr.bf16.mxu1 %v1070_v0  ;;  %950 = vmatprep.subr.bf16.mxu0 %v1070_v0  ;;  %v966_v58 = vpack.c.bf16 %v300_v50, %v293_v17 }
  0x4e   :  { %v867_v25 = vpack.c.bf16 %v260_v11, %v253_v29  ;;  %v870_v18 = vpack.c.bf16 %v274_v26, %v267_v60  ;;  %v302_v59 = vand.u32 4294901760, %v301_v8 }
  0x50   :  { %862 = vmatpush1.bf16.msra.mxu1 %v861_v32  ;;  %952 = vmatpush1.bf16.msra.mxu0 %v951_v7  ;;  %v281_v32 = vand.u32 4294901760, %v280_v21  ;;  %v294_v7 = vsub.f32 %v1422_v37, %v293_v17 }
  0x51   :  { %863 = vmatprep.subr.bf16.mxu1 %v1070_v0  ;;  %953 = vmatprep.subr.bf16.mxu0 %v1070_v0 }
  0x52   :  { %v873_v20 = vpack.c.bf16 %v288_v49, %v281_v32  ;;  %v295_v39 = vand.u32 4294901760, %v294_v7 }
  0x54   :  { %865 = vmatpush1.bf16.msra.mxu1 %v864_v22  ;;  %955 = vmatpush1.bf16.msra.mxu0 %v954_v1  ;;  %v876_v44 = vpack.c.bf16 %v302_v59, %v295_v39  ;;  %v882_v1 = vpack.c.bf16 %v1260_v63, %v1254_v61 }
  0x55   :  { %866 = vmatprep.subr.bf16.mxu1 %v1070_v0  ;;  %956 = vmatprep.subr.bf16.mxu0 %v1070_v0 }
  0x58   :  { %868 = vmatpush1.bf16.msra.mxu1 %v867_v25  ;;  %958 = vmatpush1.bf16.msra.mxu0 %v957_v9 }
  0x59   :  { %869 = vmatprep.subr.bf16.mxu1 %v1070_v0  ;;  %959 = vmatprep.subr.bf16.mxu0 %v1070_v0 }
  0x5c   :  { %871 = vmatpush1.bf16.msra.mxu1 %v870_v18  ;;  %961 = vmatpush1.bf16.msra.mxu0 %v960_v57 }
  0x5d   :  { %872 = vmatprep.subr.bf16.mxu1 %v1070_v0  ;;  %962 = vmatprep.subr.bf16.mxu0 %v1070_v0 }
  0x60   :  { %874 = vmatpush1.bf16.msra.mxu1 %v873_v20  ;;  %964 = vmatpush1.bf16.msra.mxu0 %v963_v34 }
  0x61   :  { %875 = vmatprep.subr.bf16.mxu1 %v1070_v0  ;;  %965 = vmatprep.subr.bf16.mxu0 %v1070_v0 }
  0x64   :  { %877 = vmatpush1.bf16.msra.mxu1 %v876_v44  ;;  %967 = vmatpush1.bf16.msra.mxu0 %v966_v58 }
  0x65   :  { %878 = vmatprep.subr.bf16.mxu1 %v1070_v0  ;;  %968 = vmatprep.subr.bf16.mxu0 %v1070_v0 }
  0x67   :  { %331 = vmatmul.mubr.f32.vlgmr.msra.gmra.mrb[0].mxu1 %v1232_v54  ;;  %673 = vmatmul.mubr.f32.vlgmr.msra.gmra.mrb[0].mxu0 %v1232_v54 }
  0x68   :  { %880 = vmatpush1.bf16.msra.mxu1 %v879_v43  ;;  %970 = vmatpush1.bf16.msra.mxu0 %v1128_v12  ;;  %v888_v12 = vpack.c.bf16 %v1318_v36, %v1313_v30 }
  0x69   :  { %881 = vmatprep.subr.bf16.mxu1 %v1070_v0  ;;  %971 = vmatprep.subr.bf16.mxu0 %v1070_v0 }
  0x6a   :  { %442 = vmatprep.mubr.f32.mxu1 %v1220_v51  ;;  %763 = vmatprep.mubr.f32.mxu0 %v1211_v48  ;;  %v906_v48 = vpack.c.bf16 %v1427_v15, %v1422_v37 }
  0x6c   :  { %883 = vmatpush1.bf16.msra.mxu1 %v882_v1  ;;  %973 = vmatpush1.bf16.msra.mxu0 %v1136_v16  ;;  %v891_v16 = vpack.c.bf16 %v1343_v6, %v1338_v62 }
  0x6d   :  { %884 = vmatprep.subr.bf16.mxu1 %v1070_v0  ;;  %974 = vmatprep.subr.bf16.mxu0 %v1070_v0 }
  0x70   :  { %886 = vmatpush1.bf16.msra.mxu1 %v885_v52  ;;  %976 = vmatpush1.bf16.msra.mxu0 %v1156_v24  ;;  %v894_v24 = vpack.c.bf16 %v1361_v33, %v1356_v28 }
  0x71   :  { %887 = vmatprep.subr.bf16.mxu1 %v1070_v0  ;;  %977 = vmatprep.subr.bf16.mxu0 %v1070_v0 }
  0x74   :  { %889 = vmatpush1.bf16.msra.mxu1 %v888_v12  ;;  %979 = vmatpush1.bf16.msra.mxu0 %v1175_v31  ;;  %v897_v31 = vpack.c.bf16 %v1377_v40, %v1372_v35 }
  0x75   :  { %890 = vmatprep.subr.bf16.mxu1 %v1070_v0  ;;  %980 = vmatprep.subr.bf16.mxu0 %v1070_v0 }
  0x78   :  { %892 = vmatpush1.bf16.msra.mxu1 %v891_v16  ;;  %982 = vmatpush1.bf16.msra.mxu0 %v1191_v38  ;;  %v900_v38 = vpack.c.bf16 %v1395_v47, %v1390_v42 }
  0x79   :  { %893 = vmatprep.subr.bf16.mxu1 %v1070_v0  ;;  %983 = vmatprep.subr.bf16.mxu0 %v1070_v0 }
  0x7c   :  { %895 = vmatpush1.bf16.msra.mxu1 %v894_v24  ;;  %985 = vmatpush1.bf16.msra.mxu0 %v1207_v45  ;;  %v903_v45 = vpack.c.bf16 %v1411_v27, %v1406_v56 }
  0x7d   :  { %896 = vmatprep.subr.bf16.mxu1 %v1070_v0  ;;  %986 = vmatprep.subr.bf16.mxu0 %v1070_v0 }
  0x80   :  { %898 = vmatpush1.bf16.msra.mxu1 %v897_v31  ;;  %988 = vmatpush1.bf16.msra.mxu0 %v1240_v55 }
  0x81   :  { %899 = vmatprep.subr.bf16.mxu1 %v1070_v0  ;;  %989 = vmatprep.subr.bf16.mxu0 %v1070_v0 }
  0x84   :  { %901 = vmatpush1.bf16.msra.mxu1 %v900_v38  ;;  %991 = vmatpush1.bf16.msra.mxu0 %v1273_v4 }
  0x85   :  { %902 = vmatprep.subr.bf16.mxu1 %v1070_v0  ;;  %992 = vmatprep.subr.bf16.mxu0 %v1070_v0 }
  0x88   :  { %904 = vmatpush1.bf16.msra.mxu1 %v903_v45  ;;  %994 = vmatpush1.bf16.msra.mxu0 %v1303_v10  ;;  %v779_v10 = vand.u32 127, %v1531_v14 }
  0x89   :  { %905 = vmatprep.subr.bf16.mxu1 %v1070_v0  ;;  %995 = vmatprep.subr.bf16.mxu0 %v1070_v0 }
  0x8c   :  { %907 = vmatpush1.bf16.msra.mxu1 %v906_v48  ;;  %997 = vmatpush1.bf16.msra.mxu0 %v1330_v19 }
  0x8f   :  { %445 = vmatmul.mubr.f32.vlgmr.msra.gmra.mrb[0].mxu1 %v1265_v3  ;;  %765 = vmatmul.mubr.f32.vlgmr.msra.gmra.mrb[0].mxu0 %v1232_v54 }
  0x99   :  { %v785_v0 = vpop.permute.xlu0 %784 }
  0x9a   :  { %vm786_vm3 = vcmp.eq.s32.totalorder %v779_v10, %v785_v0 }
 0x162   :  { %v446_v51 = vpop.f32.mrb[0].mxu1  ;;  %v766_v53 = vpop.f32.mrb[0].mxu0 }
 0x163   :  { %v998_v55 = vadd.f32 %v766_v53, %v446_v51  ;;  %v448_v61 = vpop.f32.mrb[1].mxu1  ;;  %v768_v63 = vpop.f32.mrb[1].mxu0 }
 0x165   :  { %1017 = vrsqrt.f32 %v998_v55  ;;  %vm772_vm1 = vcmp.eq.f32.partialorder %v998_v55, inf  ;;  %v775_v30 = vand.u32 2147483648, %v998_v55  ;;  %vm774_vm2 = vcmp.eq.f32.partialorder %v998_v55, 0.0 }
 0x16f   :  { %v1018_v4 = vpop.eup %1017 }
 0x170   :  { %v771_v13 = vmul.f32 %v1018_v4, %v998_v55 }
 0x172   :  { %v773_v36 = vsel %vm772_vm1, %v998_v55, %v771_v13 }
 0x173   :  { %v776_v19 = vsel %vm774_vm2, %v775_v30, %v773_v36 }
 0x174   :  { %v817_v62 = vadd.f32 -0.1, %v776_v19  ;;  %v780_v3 = vsub.f32 0.9, %v776_v19 }
 0x176   :  { %v782_v54 = vmul.f32 0.5, %v817_v62 }
 0x178   :  { %v787_v6 = vsel %vm786_vm3, %v780_v3, %v782_v54 }
 0x179   :  { %v788_v28 = vmax.f32 %v787_v6, 0.0 }
 0x17b   :  { %v790_v33 = vsel %vm789_vm4, %v788_v28, 0.0 }
 0x17c   :  { %791 = vadd.xlane.f32.xlu0 %v790_v33 }
 0x209   :  { %v792_v35 = vpop.xlane.xlu0 %791 }
 0x20a   :  { %v793_v40 = vrot.slane %v792_v35, 4 }
 0x20c   :  { %v794_v42 = vadd.f32 %v793_v40, %v792_v35 }
 0x20e   :  { %v795_v47 = vrot.slane %v794_v42, 2 }
 0x210   :  { %v796_v56 = vadd.f32 %v795_v47, %v794_v42 }
 0x212   :  { %v797_v27 = vrot.slane %v796_v56, 1 }
 0x214   :  { %v798_v37 = vadd.f32 %v797_v27, %v796_v56 }
 0x216   :  { %1007 = vpush %v798_v37 }
 0x247   :  { %s1008_s29 = spop %1007 }
 0x248   :  { %v800_v15 = vstv %s1008_s29 }
 0x249   :  { %801 = vst [vmem:[#allocation5] sm:$0xff] %v800_v15 }
 0x24a   :  { %1052 = shalt.err (!%p1049_p12)
}
 0x24b   :  { %s1053_s6 = scalar_lea.hbm %s1521_s3, 128 }
 0x24c   :  { %p1054_p13 = scmp.ne.s32.totalorder %s1521_s3, %s1053_s6  ;;  %p1057_p0 = scmp.lt.u32.totalorder %s1053_s6, %s1521_s3 }
 0x24e   :  { %p1059_p1 = pnand %p1057_p0, %p1054_p13 }
 0x250   :  { %1062 = shalt.err (!%p1059_p1)
}
 0x251   :  { %811 = dma.vmem_to_hbm [thread:$0]  %s809_s28, 128, %s1521_s3, [#allocation4]  }
 0x252   :  { %1065 = dma.done.wait [#allocation4], 128  }
 0x253   :  { %1066 = vsyncadd [#allocation4], 4294967168 }
 0x254   :  { %815 = vsyncpa [#allocation3], 1 }
 0x255   :  { %816 = vsyncpa [#allocation4], 1 }

</bundles_post_ra>
